<compile_context>
chip_gen: v6e
topology: v6e:2x2x1
jax: 0.10.0
libtpu: 0.0.40
codegen_flags: <defaults>
</compile_context>

<pallas_src>
import functools

import jax
import jax.numpy as jnp
import numpy as np
from jax import lax
from jax.experimental import pallas as pl
from jax.experimental.pallas import tpu as pltpu

BN_EPS = 1e-5
SUBLANE = 16  # bf16 native sublane tile; channel slabs are padded to this.

# Subpixel phases (py, px); phase index q = 2*py + px.
PHASES = ((0, 0), (0, 1), (1, 0), (1, 1))
# 3x3 neighbourhood taps of the pre-unpool input, row-major.
TAPS3 = tuple((dh, dw) for dh in (-1, 0, 1) for dw in (-1, 0, 1))


def _shift_set(parity):
    """Half-res shifts of an input phase of this parity needed by a full-res
    3x3 conv."""
    return (0, 1) if parity == 0 else (-1, 0)


# The 16 (input-phase, dh, dw) slabs of the 3x3-stage patch matrix.
P3_SLABS = tuple((p, dh, dw)
                 for p, (py, px) in enumerate(PHASES)
                 for dh in _shift_set(py)
                 for dw in _shift_set(px))


def _round_up(n, m):
    return ((n + m - 1) // m) * m


# ----------------------------------------------------------------------------
# Fused per-module Pallas kernel (one batch image per grid step).
# ----------------------------------------------------------------------------
def _upproj_phase_kernel(x_ref, w5u_ref, b5u_ref, w5b_ref, b5b_ref,
                         w3_ref, b3_ref, o_ref, p5_ref, p3_ref, x1_ref,
                         *, H, W, cout_p, roll_sign):
    """Fused UpProjModule on one image, subpixel-phase (pre-unpool) form.

    x_ref  : (1, cin_p, H*W) bf16   pre-unpool input, spatial on lanes
    w5u_ref: (4*cout_p, 9*cin_p)    upper conv1 5x5, BN-folded, phase form
    b5u_ref: (4*cout_p, 1)   f32
    w5b_ref: (4*cout,   9*cin_p)    bottom conv  5x5, BN-folded, phase form
    b5b_ref: (4*cout,   1)   f32
    w3_ref : (4*cout,  16*cout_p)   upper conv2 3x3, BN-folded, phase form
    b3_ref : (4*cout,   1)   f32
    o_ref  : (1, 4*cout, H*W) f32   phase-major output
    p5_ref : (9*cin_p,  H*W) bf16   5x5-stage im2col scratch
    p3_ref : (16*cout_p, H*W) bf16  3x3-stage im2col scratch
    x1_ref : (4*cout_p, H*W) bf16   upper-branch conv1 activations
    """
    HW = H * W
    cin_p = x_ref.shape[1]

    x = x_ref[0].astype(jnp.float32)                       # (cin_p, HW)

    # Boundary masks, hoisted and materialized at full sublane extent.
    idx = lax.broadcasted_iota(jnp.int32, (cin_p, HW), 1)
    row = idx // W
    col = idx - row * W
    row_ok = {0: None, -1: row >= 1, 1: row < (H - 1)}
    col_ok = {0: None, -1: col >= 1, 1: col < (W - 1)}
    masks = {}
    for dh in (-1, 0, 1):
        for dw in (-1, 0, 1):
            r, c = row_ok[dh], col_ok[dw]
            masks[(dh, dw)] = (r if c is None else
                               c if r is None else jnp.logical_and(r, c))

    def shifted(v, dh, dw):
        """v viewed as (C, H, W): v[:, h+dh, w+dw] with zero padding, flat."""
        d = dh * W + dw
        if d != 0:
            v = pltpu.roll(v, (roll_sign * d) % HW, axis=1)  # XLU rotate
        m = masks[(dh, dw)]
        if m is not None:
            v = jnp.where(m[:v.shape[0], :], v, jnp.zeros_like(v))
        return v

    # --- both 5x5 branches, fused with the zero-insert unpool: one 9-tap
    # im2col over the 3x3 neighbourhood of the pre-unpool input, two matmuls.
    for t, (dh, dw) in enumerate(TAPS3):
        p5_ref[pl.ds(t * cin_p, cin_p), :] = (
            shifted(x, dh, dw).astype(p5_ref.dtype))

    x1_ref[...] = jnp.maximum(
        jnp.dot(w5u_ref[...], p5_ref[...],
                preferred_element_type=jnp.float32) + b5u_ref[...],
        0.0).astype(x1_ref.dtype)                 # upper: conv5 + BN + ReLU
    # Bottom branch (conv5 + BN) parked in the output block right away so it
    # is not live in vregs across the 3x3 stage.
    o_ref[0] = (jnp.dot(w5b_ref[...], p5_ref[...],
                        preferred_element_type=jnp.float32) + b5b_ref[...])

    # --- upper-branch 3x3 conv, still phase-separated at half resolution:
    # 16 half-res tap slabs streamed from the x1 VMEM scratch.
    for p, (py, px) in enumerate(PHASES):
        xp = x1_ref[pl.ds(p * cout_p, cout_p), :].astype(jnp.float32)
        for dh in _shift_set(py):
            for dw in _shift_set(px):
                s = P3_SLABS.index((p, dh, dw))
                p3_ref[pl.ds(s * cout_p, cout_p), :] = (
                    shifted(xp, dh, dw).astype(p3_ref.dtype))

    u = (jnp.dot(w3_ref[...], p3_ref[...],
                 preferred_element_type=jnp.float32) + b3_ref[...])
    o_ref[0] = jnp.maximum(o_ref[0] + u, 0.0)     # residual add + final ReLU


# ----------------------------------------------------------------------------
# Module forward (wrapper around the fused kernel).
# ----------------------------------------------------------------------------
def up_proj_module(x, kp, roll_sign):
    """x: (N, Cin, Hi, Wi) NCHW f32 -> (N, Cout, 2*Hi, 2*Wi) f32."""
    N, Cin, Hi, Wi = x.shape
    HW = Hi * Wi
    cin_p = kp['w5u'].shape[1] // 9
    cout_p = kp['w3'].shape[1] // 16
    cout = kp['w5b'].shape[0] // 4

    xb = x.reshape(N, Cin, HW)
    if cin_p > Cin:
        xb = jnp.pad(xb, ((0, 0), (0, cin_p - Cin), (0, 0)))
    xb = xb.astype(jnp.bfloat16)

    kernel = functools.partial(_upproj_phase_kernel, H=Hi, W=Wi,
                               cout_p=cout_p, roll_sign=roll_sign)
    out = pl.pallas_call(
        kernel,
        out_shape=jax.ShapeDtypeStruct((N, 4 * cout, HW), jnp.float32),
        grid=(N,),
        in_specs=[
            pl.BlockSpec((1, cin_p, HW), lambda n: (n, 0, 0)),
            pl.BlockSpec(kp['w5u'].shape, lambda n: (0, 0)),
            pl.BlockSpec(kp['b5u'].shape, lambda n: (0, 0)),
            pl.BlockSpec(kp['w5b'].shape, lambda n: (0, 0)),
            pl.BlockSpec(kp['b5b'].shape, lambda n: (0, 0)),
            pl.BlockSpec(kp['w3'].shape, lambda n: (0, 0)),
            pl.BlockSpec(kp['b3'].shape, lambda n: (0, 0)),
        ],
        out_specs=pl.BlockSpec((1, 4 * cout, HW), lambda n: (n, 0, 0)),
        scratch_shapes=[
            pltpu.VMEM((9 * cin_p, HW), jnp.bfloat16),    # 5x5-stage patches
            pltpu.VMEM((16 * cout_p, HW), jnp.bfloat16),  # 3x3-stage patches
            pltpu.VMEM((4 * cout_p, HW), jnp.bfloat16),   # x1 activations
        ],
        compiler_params=pltpu.CompilerParams(
            dimension_semantics=("parallel",),
            vmem_limit_bytes=48 * 1024 * 1024),
    )(xb, kp['w5u'], kp['b5u'], kp['w5b'], kp['b5b'], kp['w3'], kp['b3'])

    # De-interleave the 4 subpixel phases (tiny XLA glue, no zero-inflation).
    out = out.reshape(N, 2, 2, cout, Hi, Wi)
    out = jnp.transpose(out, (0, 3, 4, 1, 5, 2)).reshape(
        N, cout, 2 * Hi, 2 * Wi)
    return out


@functools.partial(jax.jit, static_argnames=("roll_sign",))
def up_proj(x, kparams, roll_sign):
    for kp in kparams:
        x = up_proj_module(x, kp, roll_sign)
    return x


# ----------------------------------------------------------------------------
# pltpu.roll direction probe (robust against convention changes across jax
# versions; result is a Python int used as a static kernel parameter).
# ----------------------------------------------------------------------------
def _probe_roll_direction():
    def k(x_ref, o_ref):
        o_ref[...] = pltpu.roll(x_ref[...], 1, axis=1)

    x = jnp.tile(jnp.arange(128, dtype=jnp.int32)[None, :], (8, 1))
    y = pl.pallas_call(
        k, out_shape=jax.ShapeDtypeStruct((8, 128), jnp.int32))(x)
    # jnp.roll convention: out[i] = in[i - shift]  =>  out[0, 0] == 127.
    return -1 if int(y[0, 0]) == 127 else 1


# ----------------------------------------------------------------------------
# Parameters (deterministic, synthetic). Eval-mode BN folded on the host.
# ----------------------------------------------------------------------------
def _fold_bn(gamma, beta, mean, var):
    scale = gamma / jnp.sqrt(var + BN_EPS)
    return scale, beta - mean * scale


def init_module_params(key, cin):
    cout = cin // 2
    ks = jax.random.split(key, 15)

    def conv_w(k, kh, kw, ci, co):
        return jax.random.normal(k, (kh, kw, ci, co), jnp.float32) * (
            1.0 / jnp.sqrt(kh * kw * ci))

    def bn(k1, k2, k3, k4, c):
        gamma = 1.0 + 0.1 * jax.random.normal(k1, (c,), jnp.float32)
        beta = 0.1 * jax.random.normal(k2, (c,), jnp.float32)
        mean = 0.1 * jax.random.normal(k3, (c,), jnp.float32)
        var = jax.random.uniform(k4, (c,), jnp.float32, minval=0.5, maxval=1.5)
        return _fold_bn(gamma, beta, mean, var)

    u1w = conv_w(ks[0], 5, 5, cin, cout)
    u1s, u1b = bn(ks[1], ks[2], ks[3], ks[4], cout)
    u2w = conv_w(ks[5], 3, 3, cout, cout)
    u2s, u2b = bn(ks[6], ks[7], ks[8], ks[9], cout)
    bw = conv_w(ks[10], 5, 5, cin, cout)
    bs, bb = bn(ks[11], ks[12], ks[13], ks[14], cout)
    return dict(u1w=u1w, u1s=u1s, u1b=u1b, u2w=u2w, u2s=u2s, u2b=u2b,
                bw=bw, bs=bs, bb=bb)


def prep_module_params(p):
    """Fold BN, remap HWIO 5x5/3x3 weights to subpixel-phase matmul weights.

    Phase q = (py, px): the 5x5 conv on the zero-insert-unpooled input at
    full-res pixel (2h+py, 2w+px) only touches pre-unpool taps (dh, dw) in
    {-1,0,1}^2 with original kernel position kh = 2*dh + (2 - py),
    kw = 2*dw + (2 - px) when that position exists.
    """
    _, _, cin, cout = p['u1w'].shape
    cin_p = _round_up(cin, SUBLANE)
    cout_p = _round_up(cout, SUBLANE)

    w5u_f = np.asarray(p['u1w'] * p['u1s'][None, None, None, :], np.float32)
    w5b_f = np.asarray(p['bw'] * p['bs'][None, None, None, :], np.float32)
    w3_f = np.asarray(p['u2w'] * p['u2s'][None, None, None, :], np.float32)
    b5u_v = np.asarray(p['u1b'], np.float32)
    b5b_v = np.asarray(p['bb'], np.float32)
    b3_v = np.asarray(p['u2b'], np.float32)

    w5u = np.zeros((4 * cout_p, 9 * cin_p), np.float32)
    w5b = np.zeros((4 * cout, 9 * cin_p), np.float32)
    b5u = np.zeros((4 * cout_p, 1), np.float32)
    b5b = np.zeros((4 * cout, 1), np.float32)
    for q, (py, px) in enumerate(PHASES):
        b5u[q * cout_p:q * cout_p + cout, 0] = b5u_v
        b5b[q * cout:(q + 1) * cout, 0] = b5b_v
        for t, (dh, dw) in enumerate(TAPS3):
            kh = 2 * dh + 2 if py == 0 else 2 * dh + 1
            kw = 2 * dw + 2 if px == 0 else 2 * dw + 1
            if not (0 <= kh < 5 and 0 <= kw < 5):
                continue                     # tap belongs to another phase
            w5u[q * cout_p:q * cout_p + cout,
                t * cin_p:t * cin_p + cin] = w5u_f[kh, kw].T
            w5b[q * cout:(q + 1) * cout,
                t * cin_p:t * cin_p + cin] = w5b_f[kh, kw].T

    w3 = np.zeros((4 * cout, 16 * cout_p), np.float32)
    b3 = np.zeros((4 * cout, 1), np.float32)
    for q, (qy, qx) in enumerate(PHASES):
        b3[q * cout:(q + 1) * cout, 0] = b3_v
        for dh in (-1, 0, 1):
            for dw in (-1, 0, 1):
                py = (qy + dh) % 2
                px = (qx + dw) % 2
                dhp = (qy + dh - py) // 2
                dwp = (qx + dw - px) // 2
                s = P3_SLABS.index((PHASES.index((py, px)), dhp, dwp))
                w3[q * cout:(q + 1) * cout,
                   s * cout_p:s * cout_p + cout] = w3_f[dh + 1, dw + 1].T

    return dict(w5u=jnp.asarray(w5u, jnp.bfloat16),
                b5u=jnp.asarray(b5u),
                w5b=jnp.asarray(w5b, jnp.bfloat16),
                b5b=jnp.asarray(b5b),
                w3=jnp.asarray(w3, jnp.bfloat16),
                b3=jnp.asarray(b3))


# ----------------------------------------------------------------------------
# Pure-JAX reference (NCHW, f32) for the self-check.
# ----------------------------------------------------------------------------
def unpool_nchw(x):
    N, C, H, W = x.shape
    y = x[:, :, :, None, :, None]
    y = jnp.pad(y, ((0, 0), (0, 0), (0, 0), (0, 1), (0, 0), (0, 1)))
    return y.reshape(N, C, 2 * H, 2 * W)


def _conv_ref(x, w, pad):
    return lax.conv_general_dilated(
        x, w, window_strides=(1, 1), padding=[(pad, pad), (pad, pad)],
        dimension_numbers=('NCHW', 'HWIO', 'NCHW'))


def up_proj_module_ref(x, p):
    def pc(v):
        return v[None, :, None, None]
    x = unpool_nchw(x)
    x2 = _conv_ref(x, p['bw'], 2) * pc(p['bs']) + pc(p['bb'])
    x1 = jnp.maximum(_conv_ref(x, p['u1w'], 2) * pc(p['u1s']) + pc(p['u1b']),
                     0.0)
    x1 = _conv_ref(x1, p['u2w'], 1) * pc(p['u2s']) + pc(p['u2b'])
    return jnp.maximum(x1 + x2, 0.0)


if __name__ == "__main__":
    key = jax.random.PRNGKey(0)
    kx, kp = jax.random.split(key)

    in_channels = 16                       # layers produce 8, 4, 2, 1 channels
    x = jax.random.normal(kx, (2, in_channels, 16, 16), jnp.float32)   # NCHW

    layer_keys = jax.random.split(kp, 4)
    params = [init_module_params(layer_keys[i], in_channels >> i)
              for i in range(4)]
    kparams = [prep_module_params(p) for p in params]

    roll_sign = _probe_roll_direction()

    out = jax.block_until_ready(up_proj(x, kparams, roll_sign=roll_sign))
    assert out.shape == (2, 1, 256, 256), out.shape

    ref = x
    for p in params:
        ref = up_proj_module_ref(ref, p)
    ref = jax.block_until_ready(ref)

    err = float(jnp.max(jnp.abs(out - ref)))
    tol = 3e-2 + 2e-2 * float(jnp.max(jnp.abs(ref)))   # bf16 weight/patch path
    if err > tol:
        raise AssertionError(f"mismatch vs reference: max abs err {err} > {tol}")
    print("KERNEL_OK")
</pallas_src>

<mosaic_0001>
module attributes {stable_mosaic.version = 11 : i64} {
  func.func @k(%arg0: memref<8x128xi32, #tpu.memory_space<vmem>>, %arg1: memref<8x128xi32, #tpu.memory_space<vmem>>) attributes {dimension_semantics = [], scalar_prefetch = 0 : i64, scratch_operands = 0 : i64, tpu.core_type = #tpu.core_type<tc>} {
    %c0 = arith.constant 0 : index
    %c0_0 = arith.constant 0 : index
    %0 = vector.load %arg0[%c0, %c0_0] : memref<8x128xi32, #tpu.memory_space<vmem>>, vector<8x128xi32>
    %c1_i32 = arith.constant 1 : i32
    %1 = tpu.dynamic_rotate %0 by %c1_i32 dim 1 : vector<8x128xi32>, i32 -> vector<8x128xi32>
    %c0_1 = arith.constant 0 : index
    %c0_2 = arith.constant 0 : index
    %2 = vector.load %arg1[%c0_1, %c0_2] : memref<8x128xi32, #tpu.memory_space<vmem>>, vector<8x128xi32>
    tpu.vector_store %arg1[%c0_1, %c0_2], %1 {strides = array<i32>} : memref<8x128xi32, #tpu.memory_space<vmem>>, vector<8x128xi32>,
    return
  }
}

</mosaic_0001>

<bundles_post_ra>
// kernel: tpu_custom_call.1
= control target key start
LH: loop header
LB: loop body
LE: loop exit
PB: predicated region body
PF: predicated region fallthrough
CT: control target
= control target key end

     0   :  { %6 = vsyncpa [#allocation3], 0  ;;  %s106_s0 = inlined_call_operand.hbm [shape: s32[8,128], index: 0, kind: input, shape index: {}]   ;;  %s107_s1 = inlined_call_operand.hbm [shape: s32[8,128], index: 1, kind: output, shape index: {}]  }
   0x1   :  { %7 = vsyncpa [#allocation4], 0  ;;  %s87_s6 = smov [#allocation2]  }
   0x2   :  { %s14_s7 = sshll.u32 %s87_s6, 4  ;;  %s15_s7 = int_to_ptr.vmem [resolvable:$true] %s14_s7 }
   0x3   :  { %s51_s8 = scalar_lea.vmem %s15_s7, 128  ;;  %p56_p1 = scmp.lt.s32.totalorder %s15_s7, %s15_s7 }
   0x4   :  { %p52_p0 = scmp.ne.s32.totalorder %s15_s7, %s51_s8  ;;  %p57_p2 = scmp.lt.s32.totalorder %s51_s8, %s51_s8 }
   0x6   :  { %p58_p3 = por %p57_p2, %p56_p1 }
   0x8   :  { %p59_p4 = pnand %p58_p3, %p52_p0 }
   0xa   :  { %62 = shalt.err (!%p59_p4)
}
   0xb   :  { %17 = dma.hbm_to_vmem [thread:$0]  %s106_s0, 128, %s15_s7, [#allocation3]  }
   0xc   :  { %83 = dma.done.wait [#allocation3], 128  }
   0xd   :  { %84 = vsyncadd [#allocation3], 4294967168  ;;  %v21_v0 = vld [vmem:[#allocation2] sm:$0xff]  ;;  %s88_s11 = smov 1   ;;  %s89_s12 = smov [#allocation5]  }
   0xe   :  { %22 = vrot.lane.b32.xlu0 %v21_v0, %s88_s11  ;;  %s31_s13 = sshll.u32 %s89_s12, 4  ;;  %s32_s13 = int_to_ptr.vmem [resolvable:$true] %s31_s13 }
   0xf   :  { %s63_s14 = scalar_lea.vmem %s32_s13, 128  ;;  %p68_p6 = scmp.lt.s32.totalorder %s32_s13, %s32_s13 }
  0x10   :  { %p64_p5 = scmp.ne.s32.totalorder %s32_s13, %s63_s14  ;;  %p69_p7 = scmp.lt.s32.totalorder %s63_s14, %s63_s14 }
  0x12   :  { %p70_p8 = por %p69_p7, %p68_p6 }
  0x14   :  { %p71_p9 = pnand %p70_p8, %p64_p5 }
  0x80   :  { %v23_v1 = vpop.permute.xlu0 %22 }
  0x81   :  { %24 = vst [vmem:[#allocation5] sm:$0xff] %v23_v1 }
  0x82   :  { %74 = shalt.err (!%p71_p9)
}
  0x83   :  { %34 = dma.vmem_to_hbm [thread:$0]  %s32_s13, 128, %s107_s1, [#allocation4]  }
  0x84   :  { %85 = dma.done.wait [#allocation4], 128  }
  0x85   :  { %86 = vsyncadd [#allocation4], 4294967168 }
  0x86   :  { %38 = vsyncpa [#allocation3], 1 }
  0x87   :  { %39 = vsyncpa [#allocation4], 1 }

</bundles_post_ra>
